<compile_context>
chip_gen: v6e
topology: v6e:2x2x1
jax: 0.10.0
libtpu: 0.0.40
codegen_flags: <defaults>
</compile_context>

<pallas_src>
import math

import jax
import jax.numpy as jnp
from jax.experimental import pallas as pl
from jax.experimental.pallas import tpu as pltpu


def _round_up(x, m):
    return ((x + m - 1) // m) * m


# ------------------------------ kernel bodies ------------------------------

def _gated_skip_kernel_proj(in_ref, out_ref, wproj_ref, wci_ref, wco_ref,
                            b_ref, o_ref):
    # in_dim != out_dim: project in_x with the bias-free Linear first.
    in_p = jnp.dot(in_ref[...], wproj_ref[...],
                   preferred_element_type=jnp.float32)
    # Cast back to weight dtype for the gate matmul (no-op for f32 weights,
    # keeps a fast single-pass MXU matmul for bf16 weights).
    x1 = jnp.dot(in_p.astype(wci_ref.dtype), wci_ref[...],
                 preferred_element_type=jnp.float32)
    x2 = jnp.dot(out_ref[...], wco_ref[...],
                 preferred_element_type=jnp.float32)
    z = jax.nn.sigmoid(x1 + x2 + b_ref[...])      # b = b_ci + b_co (pre-added)
    out_f = out_ref[...].astype(jnp.float32)
    # Blend as in + z*(out - in): one fewer [TM, N] multiply than z*out+(1-z)*in.
    o_ref[...] = (in_p + z * (out_f - in_p)).astype(o_ref.dtype)


def _gated_skip_kernel_noproj(in_ref, out_ref, wci_ref, wco_ref, b_ref, o_ref):
    x1 = jnp.dot(in_ref[...], wci_ref[...], preferred_element_type=jnp.float32)
    x2 = jnp.dot(out_ref[...], wco_ref[...],
                 preferred_element_type=jnp.float32)
    z = jax.nn.sigmoid(x1 + x2 + b_ref[...])
    in_f = in_ref[...].astype(jnp.float32)
    out_f = out_ref[...].astype(jnp.float32)
    o_ref[...] = (in_f + z * (out_f - in_f)).astype(o_ref.dtype)


# ------------------------------ tiling policy ------------------------------

_VMEM_BUDGET = 40 * 1024 * 1024   # stay well under v7x's 64 MiB physical VMEM
_VMEM_LIMIT = 48 << 20            # explicit scoped-VMEM limit with headroom


def _pick_row_tile(n_rows, in_p, out_p, act_itemsize, w_itemsize, has_proj):
    """Largest row tile (multiple of 8, <=1024) that fits the VMEM budget."""
    resident_w = (2 * out_p * out_p + out_p) * w_itemsize
    if has_proj:
        resident_w += in_p * out_p * w_itemsize
    # Streamed per-row bytes: in/out/result tiles, double-buffered, plus f32
    # temporaries for the gate math.
    per_row = 2 * (in_p + 2 * out_p) * act_itemsize + 3 * out_p * 4
    avail = _VMEM_BUDGET - resident_w
    if avail <= 0:
        # TODO(synk): tile the output-feature axis (column slabs of w_ci/w_co)
        # when resident weights alone exceed the VMEM budget (huge out_dim).
        tm = 8
    else:
        tm = max(8, min(avail // per_row, 1024))
    tm = min(tm, _round_up(n_rows, 8))
    return int((tm // 8) * 8)


# -------------------------------- wrapper ----------------------------------

@jax.jit
def gated_skip_connection(in_x, out_x, params):
    """in_x: [..., in_dim], out_x: [..., out_dim] -> [..., out_dim]."""
    in_dim = in_x.shape[-1]
    out_dim = out_x.shape[-1]
    lead = in_x.shape[:-1]
    n_rows = int(math.prod(lead)) if lead else 1
    has_proj = in_dim != out_dim

    # Lane-dense feature padding (multiples of 128); padded cols are zero and
    # are sliced off at the end, so semantics are unchanged.
    in_p = _round_up(in_dim, 128)
    out_p = _round_up(out_dim, 128)

    act_itemsize = jnp.dtype(out_x.dtype).itemsize
    w_itemsize = jnp.dtype(params["w_ci"].dtype).itemsize
    tm = _pick_row_tile(n_rows, in_p, out_p, act_itemsize, w_itemsize, has_proj)
    rows_p = _round_up(n_rows, tm)
    grid = (rows_p // tm,)

    in_2d = jnp.pad(in_x.reshape(n_rows, in_dim),
                    ((0, rows_p - n_rows), (0, in_p - in_dim)))
    out_2d = jnp.pad(out_x.reshape(n_rows, out_dim),
                     ((0, rows_p - n_rows), (0, out_p - out_dim)))

    w_ci = jnp.pad(params["w_ci"],
                   ((0, out_p - out_dim), (0, out_p - out_dim)))
    w_co = jnp.pad(params["w_co"],
                   ((0, out_p - out_dim), (0, out_p - out_dim)))
    # Pre-add the two gate biases on the host: one [1, out_p] add in-kernel.
    bias = (params["b_ci"].astype(jnp.float32)
            + params["b_co"].astype(jnp.float32)).reshape(1, out_dim)
    bias = jnp.pad(bias, ((0, 0), (0, out_p - out_dim)))

    row_spec_in = pl.BlockSpec((tm, in_p), lambda i: (i, 0))
    row_spec_out = pl.BlockSpec((tm, out_p), lambda i: (i, 0))
    resident = lambda shape: pl.BlockSpec(shape, lambda i: (0, 0))

    if has_proj:
        w_proj = jnp.pad(params["w_proj"],
                         ((0, in_p - in_dim), (0, out_p - out_dim)))
        kernel = _gated_skip_kernel_proj
        operands = (in_2d, out_2d, w_proj, w_ci, w_co, bias)
        in_specs = [row_spec_in, row_spec_out,
                    resident((in_p, out_p)), resident((out_p, out_p)),
                    resident((out_p, out_p)), resident((1, out_p))]
    else:
        kernel = _gated_skip_kernel_noproj
        operands = (in_2d, out_2d, w_ci, w_co, bias)
        in_specs = [row_spec_out, row_spec_out,
                    resident((out_p, out_p)), resident((out_p, out_p)),
                    resident((1, out_p))]

    result = pl.pallas_call(
        kernel,
        out_shape=jax.ShapeDtypeStruct((rows_p, out_p), out_x.dtype),
        grid=grid,
        in_specs=in_specs,
        out_specs=row_spec_out,
        compiler_params=pltpu.CompilerParams(
            dimension_semantics=("parallel",),
            vmem_limit_bytes=_VMEM_LIMIT,
        ),
    )(*operands)

    return result[:n_rows, :out_dim].reshape(*lead, out_dim)


# ----------------------------- params / reference ---------------------------

def init_params(key, in_dim, out_dim, dtype=jnp.float32):
    """PyTorch-style uniform init; weights stored as [fan_in, fan_out]."""
    k1, k2, k3, k4, k5 = jax.random.split(key, 5)

    def u(k, shape, fan_in):
        bound = 1.0 / math.sqrt(fan_in)
        return jax.random.uniform(k, shape, dtype, -bound, bound)

    return {
        "w_proj": u(k1, (in_dim, out_dim), in_dim),    # linear (no bias)
        "w_ci":   u(k2, (out_dim, out_dim), out_dim),  # linear_coef_in
        "b_ci":   u(k3, (out_dim,), out_dim),
        "w_co":   u(k4, (out_dim, out_dim), out_dim),  # linear_coef_out
        "b_co":   u(k5, (out_dim,), out_dim),
    }


def _reference(in_x, out_x, params):
    """Pure-JAX reference mirroring the PyTorch module."""
    if in_x.shape[-1] != out_x.shape[-1]:
        in_x = in_x @ params["w_proj"]
    x1 = in_x @ params["w_ci"] + params["b_ci"]
    x2 = out_x @ params["w_co"] + params["b_co"]
    z = jax.nn.sigmoid(x1 + x2)
    return z * out_x + (1.0 - z) * in_x


if __name__ == "__main__":
    key = jax.random.PRNGKey(0)
    kp, kp2, kin, kout, kin2 = jax.random.split(key, 5)

    batch, seq = 2, 8

    # Path 1: in_dim != out_dim (exercises the projection Linear).
    in_dim, out_dim = 16, 32
    params = init_params(kp, in_dim, out_dim)
    in_x = jax.random.normal(kin, (batch, seq, in_dim), jnp.float32)
    out_x = jax.random.normal(kout, (batch, seq, out_dim), jnp.float32)
    got = jax.block_until_ready(gated_skip_connection(in_x, out_x, params))
    ref = _reference(in_x, out_x, params)
    assert got.shape == (batch, seq, out_dim)
    assert jnp.allclose(got, ref, atol=1e-5, rtol=1e-5), "proj-path mismatch"

    # Path 2: in_dim == out_dim (no projection).
    params2 = init_params(kp2, out_dim, out_dim)
    in_x2 = jax.random.normal(kin2, (batch, seq, out_dim), jnp.float32)
    got2 = jax.block_until_ready(gated_skip_connection(in_x2, out_x, params2))
    ref2 = _reference(in_x2, out_x, params2)
    assert got2.shape == (batch, seq, out_dim)
    assert jnp.allclose(got2, ref2, atol=1e-5, rtol=1e-5), "noproj-path mismatch"

    print("KERNEL_OK")
</pallas_src>

<mosaic_0001>
module attributes {stable_mosaic.version = 11 : i64} {
  func.func @_gated_skip_kernel_proj(%arg0: i32, %arg1: memref<16x128xf32, #tpu.memory_space<vmem>>, %arg2: memref<16x128xf32, #tpu.memory_space<vmem>>, %arg3: memref<128x128xf32, #tpu.memory_space<vmem>>, %arg4: memref<128x128xf32, #tpu.memory_space<vmem>>, %arg5: memref<128x128xf32, #tpu.memory_space<vmem>>, %arg6: memref<1x128xf32, #tpu.memory_space<vmem>>, %arg7: memref<16x128xf32, #tpu.memory_space<vmem>>) attributes {dimension_semantics = [#tpu.dimension_semantics<parallel>], iteration_bounds = array<i64: 1>, scalar_prefetch = 0 : i64, scratch_operands = 0 : i64, tpu.core_type = #tpu.core_type<tc>, window_params = [{transform_indices = @transform_0, window_bounds = array<i64: 16, 128>}, {transform_indices = @transform_1, window_bounds = array<i64: 16, 128>}, {pipeline_mode = #tpu.pipeline_mode<synchronous>, transform_indices = @transform_2, window_bounds = array<i64: 128, 128>}, {pipeline_mode = #tpu.pipeline_mode<synchronous>, transform_indices = @transform_3, window_bounds = array<i64: 128, 128>}, {pipeline_mode = #tpu.pipeline_mode<synchronous>, transform_indices = @transform_4, window_bounds = array<i64: 128, 128>}, {pipeline_mode = #tpu.pipeline_mode<synchronous>, transform_indices = @transform_5, window_bounds = array<i64: 1, 128>}, {transform_indices = @transform_6, window_bounds = array<i64: 16, 128>}]} {
    %c0 = arith.constant 0 : index
    %c0_0 = arith.constant 0 : index
    %0 = vector.load %arg1[%c0, %c0_0] : memref<16x128xf32, #tpu.memory_space<vmem>>, vector<16x128xf32>
    %c0_1 = arith.constant 0 : index
    %c0_2 = arith.constant 0 : index
    %1 = vector.load %arg3[%c0_1, %c0_2] : memref<128x128xf32, #tpu.memory_space<vmem>>, vector<128x128xf32>
    %cst = arith.constant dense<0.000000e+00> : vector<16x128xf32>
    %2 = tpu.matmul %0, %1, %cst {dimension_numbers = #tpu.dot_dimension_numbers<[1], [0], [0], [1], [0, 0, 1, 1], [], []>} : vector<16x128xf32>, vector<128x128xf32>, vector<16x128xf32> -> vector<16x128xf32>
    %c0_3 = arith.constant 0 : index
    %c0_4 = arith.constant 0 : index
    %3 = vector.load %arg4[%c0_3, %c0_4] : memref<128x128xf32, #tpu.memory_space<vmem>>, vector<128x128xf32>
    %cst_5 = arith.constant dense<0.000000e+00> : vector<16x128xf32>
    %4 = tpu.matmul %2, %3, %cst_5 {dimension_numbers = #tpu.dot_dimension_numbers<[1], [0], [0], [1], [0, 0, 1, 1], [], []>} : vector<16x128xf32>, vector<128x128xf32>, vector<16x128xf32> -> vector<16x128xf32>
    %c0_6 = arith.constant 0 : index
    %c0_7 = arith.constant 0 : index
    %5 = vector.load %arg2[%c0_6, %c0_7] : memref<16x128xf32, #tpu.memory_space<vmem>>, vector<16x128xf32>
    %c0_8 = arith.constant 0 : index
    %c0_9 = arith.constant 0 : index
    %6 = vector.load %arg5[%c0_8, %c0_9] : memref<128x128xf32, #tpu.memory_space<vmem>>, vector<128x128xf32>
    %cst_10 = arith.constant dense<0.000000e+00> : vector<16x128xf32>
    %7 = tpu.matmul %5, %6, %cst_10 {dimension_numbers = #tpu.dot_dimension_numbers<[1], [0], [0], [1], [0, 0, 1, 1], [], []>} : vector<16x128xf32>, vector<128x128xf32>, vector<16x128xf32> -> vector<16x128xf32>
    %8 = arith.addf %4, %7 : vector<16x128xf32>
    %c0_11 = arith.constant 0 : index
    %c0_12 = arith.constant 0 : index
    %9 = vector.load %arg6[%c0_11, %c0_12] : memref<1x128xf32, #tpu.memory_space<vmem>>, vector<1x128xf32>
    %10 = vector.broadcast %9 : vector<1x128xf32> to vector<16x128xf32>
    %11 = arith.addf %8, %10 : vector<16x128xf32>
    %12 = arith.negf %11 : vector<16x128xf32>
    %13 = math.exp %12 : vector<16x128xf32>
    %cst_13 = arith.constant 1.000000e+00 : f32
    %14 = vector.broadcast %cst_13 : f32 to vector<16x128xf32>
    %15 = arith.addf %14, %13 : vector<16x128xf32>
    %16 = arith.divf %14, %15 : vector<16x128xf32>
    %c0_14 = arith.constant 0 : index
    %c0_15 = arith.constant 0 : index
    %17 = vector.load %arg2[%c0_14, %c0_15] : memref<16x128xf32, #tpu.memory_space<vmem>>, vector<16x128xf32>
    %18 = arith.subf %17, %2 : vector<16x128xf32>
    %19 = arith.mulf %16, %18 : vector<16x128xf32>
    %20 = arith.addf %2, %19 : vector<16x128xf32>
    %c0_16 = arith.constant 0 : index
    %c0_17 = arith.constant 0 : index
    %21 = vector.load %arg7[%c0_16, %c0_17] : memref<16x128xf32, #tpu.memory_space<vmem>>, vector<16x128xf32>
    tpu.vector_store %arg7[%c0_16, %c0_17], %20 {strides = array<i32>} : memref<16x128xf32, #tpu.memory_space<vmem>>, vector<16x128xf32>,
    return
  }
  func.func @transform_0(%arg0: i32) -> (i32, i32) {
    %c0_i32 = arith.constant 0 : i32
    %c0_i32_0 = arith.constant 0 : i32
    return %arg0, %c0_i32 : i32, i32
  }
  func.func @transform_1(%arg0: i32) -> (i32, i32) {
    %c0_i32 = arith.constant 0 : i32
    %c0_i32_0 = arith.constant 0 : i32
    return %arg0, %c0_i32 : i32, i32
  }
  func.func @transform_2(%arg0: i32) -> (i32, i32) {
    %c0_i32 = arith.constant 0 : i32
    %c0_i32_0 = arith.constant 0 : i32
    %c0_i32_1 = arith.constant 0 : i32
    return %c0_i32, %c0_i32_0 : i32, i32
  }
  func.func @transform_3(%arg0: i32) -> (i32, i32) {
    %c0_i32 = arith.constant 0 : i32
    %c0_i32_0 = arith.constant 0 : i32
    %c0_i32_1 = arith.constant 0 : i32
    return %c0_i32, %c0_i32_0 : i32, i32
  }
  func.func @transform_4(%arg0: i32) -> (i32, i32) {
    %c0_i32 = arith.constant 0 : i32
    %c0_i32_0 = arith.constant 0 : i32
    %c0_i32_1 = arith.constant 0 : i32
    return %c0_i32, %c0_i32_0 : i32, i32
  }
  func.func @transform_5(%arg0: i32) -> (i32, i32) {
    %c0_i32 = arith.constant 0 : i32
    %c0_i32_0 = arith.constant 0 : i32
    %c0_i32_1 = arith.constant 0 : i32
    return %c0_i32, %c0_i32_0 : i32, i32
  }
  func.func @transform_6(%arg0: i32) -> (i32, i32) {
    %c0_i32 = arith.constant 0 : i32
    %c0_i32_0 = arith.constant 0 : i32
    return %arg0, %c0_i32 : i32, i32
  }
}

</mosaic_0001>

<bundles_post_ra>
// kernel: gated_skip_connection.1
= control target key start
LH: loop header
LB: loop body
LE: loop exit
PB: predicated region body
PF: predicated region fallthrough
CT: control target
= control target key end

     0   :  { %s703_s2 = inlined_call_operand.vmem [shape: f32[128,128], index: 2, kind: input, shape index: {}]   ;;  %s704_s0 = inlined_call_operand.vmem [shape: f32[16,128], index: 0, kind: input, shape index: {}]   ;;  %s705_s4 = inlined_call_operand.vmem [shape: f32[128,128], index: 4, kind: input, shape index: {}]   ;;  %s706_s3 = inlined_call_operand.vmem [shape: f32[128,128], index: 3, kind: input, shape index: {}]   ;;  %s707_s1 = inlined_call_operand.vmem [shape: f32[16,128], index: 1, kind: input, shape index: {}]   ;;  %s708_s5 = inlined_call_operand.vmem [shape: f32[1,128], index: 5, kind: input, shape index: {}]   ;;  %s709_s6 = inlined_call_operand.vmem [shape: f32[16,128], index: 6, kind: output, shape index: {}]  }
   0x1   :  { %v40_v0 = vld [vmem:[%s703_s2 + $0x78] sm:$0xff]  ;;  %v39_v1 = vld [vmem:[%s703_s2 + $0x70] sm:$0xff]  ;;  %v38_v2 = vld [vmem:[%s703_s2 + $0x68] sm:$0xff] }
   0x2   :  { %390 = vmatprep.subr.mxu0 %v40_v0  ;;  %v37_v3 = vld [vmem:[%s703_s2 + $0x60] sm:$0xff]  ;;  %v36_v5 = vld [vmem:[%s703_s2 + $0x58] sm:$0xff]  ;;  %v148_v7 = vld [vmem:[%s705_s4 + $0x70] sm:$0xff] }
   0x3   :  { %391 = vmatpush3.msra.mxu0 %v40_v0  ;;  %v23_v4 = vld [vmem:[%s704_s0] sm:$0xff]  ;;  %v149_v6 = vld [vmem:[%s705_s4 + $0x78] sm:$0xff]  ;;  %v35_v8 = vld [vmem:[%s703_s2 + $0x50] sm:$0xff] }
   0x4   :  { %392 = vmatprep.subr.mxu0 %v39_v1  ;;  %422 = vmatprep.mubr.f32.mxu0 %v23_v4  ;;  %v147_v9 = vld [vmem:[%s705_s4 + $0x68] sm:$0xff]  ;;  %v146_v11 = vld [vmem:[%s705_s4 + $0x60] sm:$0xff]  ;;  %v145_v13 = vld [vmem:[%s705_s4 + $0x58] sm:$0xff] }
   0x5   :  { %393 = vmatpush3.msra.mxu0 %v39_v1  ;;  %425 = vmatprep.subr.mxu1 %v149_v6  ;;  %v34_v10 = vld [vmem:[%s703_s2 + $0x48] sm:$0xff]  ;;  %v33_v12 = vld [vmem:[%s703_s2 + $0x40] sm:$0xff]  ;;  %v32_v14 = vld [vmem:[%s703_s2 + $0x38] sm:$0xff] }
   0x6   :  { %394 = vmatprep.subr.mxu0 %v38_v2  ;;  %426 = vmatpush3.msra.mxu1 %v149_v6  ;;  %v144_v15 = vld [vmem:[%s705_s4 + $0x50] sm:$0xff]  ;;  %v143_v17 = vld [vmem:[%s705_s4 + $0x48] sm:$0xff]  ;;  %v142_v19 = vld [vmem:[%s705_s4 + $0x40] sm:$0xff] }
   0x7   :  { %395 = vmatpush3.msra.mxu0 %v38_v2  ;;  %427 = vmatprep.subr.mxu1 %v148_v7  ;;  %v31_v16 = vld [vmem:[%s703_s2 + $0x30] sm:$0xff]  ;;  %v30_v18 = vld [vmem:[%s703_s2 + $0x28] sm:$0xff]  ;;  %v29_v20 = vld [vmem:[%s703_s2 + $0x20] sm:$0xff] }
   0x8   :  { %396 = vmatprep.subr.mxu0 %v37_v3  ;;  %428 = vmatpush3.msra.mxu1 %v148_v7  ;;  %v141_v21 = vld [vmem:[%s705_s4 + $0x38] sm:$0xff]  ;;  %v140_v23 = vld [vmem:[%s705_s4 + $0x30] sm:$0xff]  ;;  %v139_v25 = vld [vmem:[%s705_s4 + $0x28] sm:$0xff] }
   0x9   :  { %397 = vmatpush3.msra.mxu0 %v37_v3  ;;  %429 = vmatprep.subr.mxu1 %v147_v9  ;;  %v28_v22 = vld [vmem:[%s703_s2 + $0x18] sm:$0xff]  ;;  %v27_v24 = vld [vmem:[%s703_s2 + $0x10] sm:$0xff]  ;;  %v26_v26 = vld [vmem:[%s703_s2 + $0x8] sm:$0xff] }
   0xa   :  { %398 = vmatprep.subr.mxu0 %v36_v5  ;;  %430 = vmatpush3.msra.mxu1 %v147_v9  ;;  %v138_v27 = vld [vmem:[%s705_s4 + $0x20] sm:$0xff]  ;;  %v137_v29 = vld [vmem:[%s705_s4 + $0x18] sm:$0xff]  ;;  %v24_v30 = vld [vmem:[%s704_s0 + $0x8] sm:$0xff] }
   0xb   :  { %399 = vmatpush3.msra.mxu0 %v36_v5  ;;  %431 = vmatprep.subr.mxu1 %v146_v11  ;;  %v25_v28 = vld [vmem:[%s703_s2] sm:$0xff]  ;;  %v131_v31 = vld [vmem:[%s706_s3 + $0x78] sm:$0xff]  ;;  %v136_v32 = vld [vmem:[%s705_s4 + $0x10] sm:$0xff] }
   0xc   :  { %400 = vmatprep.subr.mxu0 %v35_v8  ;;  %432 = vmatpush3.msra.mxu1 %v146_v11  ;;  %v130_v33 = vld [vmem:[%s706_s3 + $0x70] sm:$0xff]  ;;  %v135_v34 = vld [vmem:[%s705_s4 + $0x8] sm:$0xff]  ;;  %v128_v36 = vld [vmem:[%s706_s3 + $0x60] sm:$0xff] }
   0xd   :  { %401 = vmatpush3.msra.mxu0 %v35_v8  ;;  %433 = vmatprep.subr.mxu1 %v145_v13  ;;  %v129_v35 = vld [vmem:[%s706_s3 + $0x68] sm:$0xff]  ;;  %v127_v37 = vld [vmem:[%s706_s3 + $0x58] sm:$0xff]  ;;  %v126_v38 = vld [vmem:[%s706_s3 + $0x50] sm:$0xff] }
   0xe   :  { %402 = vmatprep.subr.mxu0 %v34_v10  ;;  %434 = vmatpush3.msra.mxu1 %v145_v13  ;;  %v125_v39 = vld [vmem:[%s706_s3 + $0x48] sm:$0xff]  ;;  %v124_v40 = vld [vmem:[%s706_s3 + $0x40] sm:$0xff]  ;;  %v123_v41 = vld [vmem:[%s706_s3 + $0x38] sm:$0xff] }
   0xf   :  { %403 = vmatpush3.msra.mxu0 %v34_v10  ;;  %435 = vmatprep.subr.mxu1 %v144_v15  ;;  %v122_v42 = vld [vmem:[%s706_s3 + $0x30] sm:$0xff]  ;;  %v121_v43 = vld [vmem:[%s706_s3 + $0x28] sm:$0xff]  ;;  %v120_v44 = vld [vmem:[%s706_s3 + $0x20] sm:$0xff] }
  0x10   :  { %404 = vmatprep.subr.mxu0 %v33_v12  ;;  %436 = vmatpush3.msra.mxu1 %v144_v15  ;;  %v119_v45 = vld [vmem:[%s706_s3 + $0x18] sm:$0xff]  ;;  %v118_v46 = vld [vmem:[%s706_s3 + $0x10] sm:$0xff]  ;;  %v134_v47 = vld [vmem:[%s705_s4] sm:$0xff] }
  0x11   :  { %405 = vmatpush3.msra.mxu0 %v33_v12  ;;  %437 = vmatprep.subr.mxu1 %v143_v17  ;;  %v117_v48 = vld [vmem:[%s706_s3 + $0x8] sm:$0xff]  ;;  %v132_v49 = vld [vmem:[%s707_s1] sm:$0xff] }
  0x12   :  { %406 = vmatprep.subr.mxu0 %v32_v14  ;;  %438 = vmatpush3.msra.mxu1 %v143_v17  ;;  %v133_v50 = vld [vmem:[%s707_s1 + $0x8] sm:$0xff]  ;;  %v116_v51 = vld [vmem:[%s706_s3] sm:$0xff] }
  0x13   :  { %407 = vmatpush3.msra.mxu0 %v32_v14  ;;  %439 = vmatprep.subr.mxu1 %v142_v19  ;;  %v333_v56 = vld [vmem:[%s708_s5] ss:$0 sm:$0xff] }
  0x14   :  { %408 = vmatprep.subr.mxu0 %v31_v16  ;;  %440 = vmatpush3.msra.mxu1 %v142_v19 }
  0x15   :  { %409 = vmatpush3.msra.mxu0 %v31_v16  ;;  %441 = vmatprep.subr.mxu1 %v141_v21 }
  0x16   :  { %410 = vmatprep.subr.mxu0 %v30_v18  ;;  %442 = vmatpush3.msra.mxu1 %v141_v21 }
  0x17   :  { %411 = vmatpush3.msra.mxu0 %v30_v18  ;;  %443 = vmatprep.subr.mxu1 %v140_v23 }
  0x18   :  { %412 = vmatprep.subr.mxu0 %v29_v20  ;;  %444 = vmatpush3.msra.mxu1 %v140_v23 }
  0x19   :  { %413 = vmatpush3.msra.mxu0 %v29_v20  ;;  %445 = vmatprep.subr.mxu1 %v139_v25 }
  0x1a   :  { %414 = vmatprep.subr.mxu0 %v28_v22  ;;  %446 = vmatpush3.msra.mxu1 %v139_v25 }
  0x1b   :  { %415 = vmatpush3.msra.mxu0 %v28_v22  ;;  %447 = vmatprep.subr.mxu1 %v138_v27 }
  0x1c   :  { %416 = vmatprep.subr.mxu0 %v27_v24  ;;  %448 = vmatpush3.msra.mxu1 %v138_v27 }
  0x1d   :  { %417 = vmatpush3.msra.mxu0 %v27_v24  ;;  %449 = vmatprep.subr.mxu1 %v137_v29 }
  0x1e   :  { %418 = vmatprep.subr.mxu0 %v26_v26  ;;  %450 = vmatpush3.msra.mxu1 %v137_v29 }
  0x1f   :  { %419 = vmatpush3.msra.mxu0 %v26_v26  ;;  %451 = vmatprep.subr.mxu1 %v136_v32 }
  0x20   :  { %420 = vmatprep.subr.mxu0 %v25_v28  ;;  %452 = vmatpush3.msra.mxu1 %v136_v32 }
  0x21   :  { %421 = vmatpush3.msra.mxu0 %v25_v28  ;;  %453 = vmatprep.subr.mxu1 %v135_v34 }
  0x22   :  { %423 = vmatmul.mubr.f32.vlgmr.msra.gmra.mxu0 %v24_v30  ;;  %460 = vmatprep.subr.mxu0 %v131_v31 }
  0x23   :  { %461 = vmatpush3.msra.mxu0 %v131_v31  ;;  %454 = vmatpush3.msra.mxu1 %v135_v34 }
  0x24   :  { %462 = vmatprep.subr.mxu0 %v130_v33  ;;  %455 = vmatprep.subr.mxu1 %v134_v47 }
  0x25   :  { %463 = vmatpush3.msra.mxu0 %v130_v33  ;;  %456 = vmatpush3.msra.mxu1 %v134_v47 }
  0x26   :  { %464 = vmatprep.subr.mxu0 %v129_v35  ;;  %457 = vmatprep.mubr.f32.mxu1 %v132_v49 }
  0x27   :  { %465 = vmatpush3.msra.mxu0 %v129_v35  ;;  %458 = vmatmul.mubr.f32.vlgmr.msra.gmra.mxu1 %v133_v50 }
  0x28   :  { %466 = vmatprep.subr.mxu0 %v128_v36 }
  0x29   :  { %467 = vmatpush3.msra.mxu0 %v128_v36 }
  0x2a   :  { %468 = vmatprep.subr.mxu0 %v127_v37 }
  0x2b   :  { %469 = vmatpush3.msra.mxu0 %v127_v37 }
  0x2c   :  { %470 = vmatprep.subr.mxu0 %v126_v38 }
  0x2d   :  { %471 = vmatpush3.msra.mxu0 %v126_v38 }
  0x2e   :  { %472 = vmatprep.subr.mxu0 %v125_v39 }
  0x2f   :  { %473 = vmatpush3.msra.mxu0 %v125_v39 }
  0x30   :  { %474 = vmatprep.subr.mxu0 %v124_v40 }
  0x31   :  { %475 = vmatpush3.msra.mxu0 %v124_v40 }
  0x32   :  { %476 = vmatprep.subr.mxu0 %v123_v41 }
  0x33   :  { %477 = vmatpush3.msra.mxu0 %v123_v41 }
  0x34   :  { %478 = vmatprep.subr.mxu0 %v122_v42 }
  0x35   :  { %479 = vmatpush3.msra.mxu0 %v122_v42 }
  0x36   :  { %480 = vmatprep.subr.mxu0 %v121_v43 }
  0x37   :  { %481 = vmatpush3.msra.mxu0 %v121_v43 }
  0x38   :  { %482 = vmatprep.subr.mxu0 %v120_v44 }
  0x39   :  { %483 = vmatpush3.msra.mxu0 %v120_v44 }
  0x3a   :  { %484 = vmatprep.subr.mxu0 %v119_v45 }
  0x3b   :  { %485 = vmatpush3.msra.mxu0 %v119_v45 }
  0x3c   :  { %486 = vmatprep.subr.mxu0 %v118_v46 }
  0x3d   :  { %487 = vmatpush3.msra.mxu0 %v118_v46 }
  0x3e   :  { %488 = vmatprep.subr.mxu0 %v117_v48 }
  0x3f   :  { %489 = vmatpush3.msra.mxu0 %v117_v48 }
  0x40   :  { %490 = vmatprep.subr.mxu0 %v116_v51 }
  0x41   :  { %491 = vmatpush3.msra.mxu0 %v116_v51 }
  0xe2   :  { %v424_v52 = vpop.f32.mrf.mxu0 }
  0xe3   :  { %v322_v5 = vsub.f32 %v133_v50, %v424_v52 }
  0xe4   :  { %v107_v53 = vpop.f32.mrf.mxu0 }
  0xe5   :  { %492 = vmatprep.mubr.f32.mxu0 %v107_v53  ;;  %v321_v7 = vsub.f32 %v132_v49, %v107_v53 }
  0xe6   :  { %493 = vmatmul.mubr.f32.vlgmr.msra.gmra.mxu0 %v424_v52 }
  0xe7   :  { %v459_v54 = vpop.f32.mrf.mxu1 }
  0xe9   :  { %v216_v58 = vpop.f32.mrf.mxu1 }
 0x1a6   :  { %v494_v55 = vpop.f32.mrf.mxu0 }
 0x1a7   :  { %v297_v57 = vadd.f32 %v494_v55, %v459_v54 }
 0x1a8   :  { %v291_v59 = vpop.f32.mrf.mxu0 }
 0x1a9   :  { %v308_v60 = vadd.f32 %v333_v56, %v297_v57  ;;  %v292_v61 = vadd.f32 %v291_v59, %v216_v58 }
 0x1ab   :  { %v335_v62 = vmul.f32 -1.442695, %v308_v60  ;;  %v307_v63 = vadd.f32 %v333_v56, %v292_v61 }
 0x1ad   :  { %495 = vpow2.f32 %v335_v62  ;;  %v334_v0 = vmul.f32 -1.442695, %v307_v63 }
 0x1af   :  { %497 = vpow2.f32 %v334_v0 }
 0x1ba   :  { %v496_v1 = vpop.eup %495 }
 0x1bb   :  { %v316_v2 = vadd.f32 1.0, %v496_v1 }
 0x1bc   :  { %v498_v3 = vpop.eup %497 }
 0x1bd   :  { %499 = vrcp.f32 %v316_v2  ;;  %v315_v4 = vadd.f32 1.0, %v498_v3 }
 0x1bf   :  { %501 = vrcp.f32 %v315_v4 }
 0x1ca   :  { %v500_v6 = vpop.eup %499 }
 0x1cb   :  { %v324_v8 = vmul.f32 %v500_v6, %v322_v5 }
 0x1cc   :  { %v502_v9 = vpop.eup %501 }
 0x1cd   :  { %v326_v10 = vadd.f32 %v424_v52, %v324_v8  ;;  %v323_v11 = vmul.f32 %v502_v9, %v321_v7 }
 0x1cf   :  { %328 = vst [vmem:[%s709_s6 + $0x8] sm:$0xff] %v326_v10  ;;  %v325_v12 = vadd.f32 %v323_v11, %v107_v53 }
 0x1d1   :  { %327 = vst [vmem:[%s709_s6] sm:$0xff] %v325_v12 }

</bundles_post_ra>
